<compile_context>
chip_gen: v7x
topology: tpu7x:2x2x1
jax: 0.10.0
libtpu: 0.0.40
codegen_flags: <defaults>
</compile_context>

<pallas_src>
import jax
import jax.numpy as jnp
from jax.experimental import pallas as pl
from jax.experimental.pallas import tpu as pltpu


def _mf_kernel(uid_ref, iid_ref, wt_ref, ht_ref, o_ref):
    """One batch tile.

    uid_ref, iid_ref : (1, TB)  int32   user / item indices (batch on lanes)
    wt_ref           : (K, NU)  float32 transposed user table (K on sublanes)
    ht_ref           : (K, NI)  float32 transposed item table
    o_ref            : (1, TB)  float32 sigmoid(rowwise dot)
    """
    tb = uid_ref.shape[1]
    nu = wt_ref.shape[1]
    ni = ht_ref.shape[1]

    uid = uid_ref[...]                                           # (1, TB)
    iid = iid_ref[...]                                           # (1, TB)

    # One-hot selectors, built on the VPU: rows index table entries.
    u_rows = jax.lax.broadcasted_iota(jnp.int32, (nu, tb), 0)    # (NU, TB)
    i_rows = jax.lax.broadcasted_iota(jnp.int32, (ni, tb), 0)    # (NI, TB)
    u_oh = (u_rows == uid).astype(jnp.float32)                   # (NU, TB)
    i_oh = (i_rows == iid).astype(jnp.float32)                   # (NI, TB)

    # Fused gather on the MXU: (K, NU) @ (NU, TB) -> (K, TB) gathered slab
    # with K on sublanes and batch on lanes (fully lane-dense vregs).
    u_t = jnp.dot(wt_ref[...], u_oh, preferred_element_type=jnp.float32)
    v_t = jnp.dot(ht_ref[...], i_oh, preferred_element_type=jnp.float32)

    # Row-wise dot product: elementwise multiply + small sublane reduce.
    s = jnp.sum(u_t * v_t, axis=0, keepdims=True)                # (1, TB)

    # sigmoid(s) = 1 / (1 + exp(-s)); exp and approx-reciprocal both land on
    # the EUP slot, leaving VALU free.
    o_ref[...] = pl.reciprocal(1.0 + jnp.exp(-s), approx=True)


def mf_forward(x, W, H, *, tb=1024):
    """Pallas equivalent of MF.forward(x, is_training=False).

    Args:
      x: (B, 2) integer array of [user_idx, item_idx] pairs.
      W: (num_users, K) float32 user embedding table.
      H: (num_items, K) float32 item embedding table.
      tb: batch tile size in lanes (rounded to a multiple of 128).

    Returns:
      (B,) float32 predicted probabilities.
    """
    x = jnp.asarray(x)
    user_idx = x[:, 0].astype(jnp.int32)
    item_idx = x[:, 1].astype(jnp.int32)
    B = user_idx.shape[0]

    # Lane-dense batch tiling: batch sits on the lane axis, tile is a
    # multiple of 128; pad the batch so the tile divides it exactly.
    tb = max(128, (int(tb) // 128) * 128)
    Bp = pl.cdiv(B, 128) * 128
    tb = min(tb, Bp)
    Bp = pl.cdiv(Bp, tb) * tb
    if Bp != B:
        pad = Bp - B
        user_idx = jnp.pad(user_idx, (0, pad))
        item_idx = jnp.pad(item_idx, (0, pad))

    uid = user_idx.reshape(1, Bp)                 # (1, Bp) batch on lanes
    iid = item_idx.reshape(1, Bp)
    WT = W.astype(jnp.float32).T                  # (K, num_users)
    HT = H.astype(jnp.float32).T                  # (K, num_items)

    grid = (Bp // tb,)

    out = pl.pallas_call(
        _mf_kernel,
        out_shape=jax.ShapeDtypeStruct((1, Bp), jnp.float32),
        grid_spec=pl.GridSpec(
            grid=grid,
            in_specs=[
                pl.BlockSpec((1, tb), lambda i: (0, i)),       # user indices
                pl.BlockSpec((1, tb), lambda i: (0, i)),       # item indices
                pl.BlockSpec(WT.shape, lambda i: (0, 0)),      # whole W^T
                pl.BlockSpec(HT.shape, lambda i: (0, 0)),      # whole H^T
            ],
            out_specs=pl.BlockSpec((1, tb), lambda i: (0, i)),
        ),
        compiler_params=pltpu.CompilerParams(
            dimension_semantics=("parallel",)),
    )(uid, iid, WT, HT)

    return out.reshape(Bp)[:B]                    # (B,)


def init_mf_params(key, num_users, num_items, embedding_k=4):
    """Deterministic N(0,1) init, mirroring torch.nn.Embedding defaults."""
    k_w, k_h = jax.random.split(key)
    W = jax.random.normal(k_w, (num_users, embedding_k), dtype=jnp.float32)
    H = jax.random.normal(k_h, (num_items, embedding_k), dtype=jnp.float32)
    return W, H


if __name__ == "__main__":
    num_users, num_items, embedding_k = 32, 64, 4
    batch = 512          # with tb=128 -> 4 parallel grid steps (>=2 for v7x)

    key = jax.random.PRNGKey(0)
    k_params, k_u, k_i = jax.random.split(key, 3)

    W, H = init_mf_params(k_params, num_users, num_items, embedding_k)

    user_ids = jax.random.randint(k_u, (batch,), 0, num_users, dtype=jnp.int32)
    item_ids = jax.random.randint(k_i, (batch,), 0, num_items, dtype=jnp.int32)
    x = jnp.stack([user_ids, item_ids], axis=1)   # (B, 2)

    pred = mf_forward(x, W, H, tb=128)
    pred = jax.block_until_ready(pred)

    # Sanity-check against a pure-JAX reference of the torch forward.
    # (tolerance covers the EUP approx-reciprocal in the in-kernel sigmoid)
    ref = jax.nn.sigmoid(jnp.sum(W[user_ids] * H[item_ids], axis=1))
    assert pred.shape == (batch,)
    assert jnp.allclose(pred, ref, atol=2e-3, rtol=2e-3), float(
        jnp.max(jnp.abs(pred - ref)))

    # TODO(synk): fit()/predict() (Adam training loop, BCELoss) are host-side
    # training utilities, not part of the forward pass, and are not ported.
    print("KERNEL_OK")
</pallas_src>

<mosaic_0001>
module attributes {stable_mosaic.version = 11 : i64} {
  func.func @_mf_kernel(%arg0: i32, %arg1: memref<1x128xi32, #tpu.memory_space<vmem>>, %arg2: memref<1x128xi32, #tpu.memory_space<vmem>>, %arg3: memref<4x32xf32, #tpu.memory_space<vmem>>, %arg4: memref<4x64xf32, #tpu.memory_space<vmem>>, %arg5: memref<1x128xf32, #tpu.memory_space<vmem>>) attributes {dimension_semantics = [#tpu.dimension_semantics<parallel>], iteration_bounds = array<i64: 4>, scalar_prefetch = 0 : i64, scratch_operands = 0 : i64, tpu.core_type = #tpu.core_type<tc>, window_params = [{transform_indices = @transform_0, window_bounds = array<i64: 1, 128>}, {transform_indices = @transform_1, window_bounds = array<i64: 1, 128>}, {pipeline_mode = #tpu.pipeline_mode<synchronous>, transform_indices = @transform_2, window_bounds = array<i64: 4, 32>}, {pipeline_mode = #tpu.pipeline_mode<synchronous>, transform_indices = @transform_3, window_bounds = array<i64: 4, 64>}, {transform_indices = @transform_4, window_bounds = array<i64: 1, 128>}]} {
    %c0 = arith.constant 0 : index
    %c0_0 = arith.constant 0 : index
    %0 = vector.load %arg1[%c0, %c0_0] : memref<1x128xi32, #tpu.memory_space<vmem>>, vector<1x128xi32>
    %c0_1 = arith.constant 0 : index
    %c0_2 = arith.constant 0 : index
    %1 = vector.load %arg2[%c0_1, %c0_2] : memref<1x128xi32, #tpu.memory_space<vmem>>, vector<1x128xi32>
    %2 = tpu.iota {dimensions = array<i32: 0>} : vector<32x128xi32>
    %3 = tpu.iota {dimensions = array<i32: 0>} : vector<64x128xi32>
    %4 = vector.broadcast %0 : vector<1x128xi32> to vector<32x128xi32>
    %5 = arith.cmpi eq, %2, %4 : vector<32x128xi32>
    %6 = arith.extui %5 : vector<32x128xi1> to vector<32x128xi32>
    %7 = arith.sitofp %6 : vector<32x128xi32> to vector<32x128xf32>
    %8 = vector.broadcast %1 : vector<1x128xi32> to vector<64x128xi32>
    %9 = arith.cmpi eq, %3, %8 : vector<64x128xi32>
    %10 = arith.extui %9 : vector<64x128xi1> to vector<64x128xi32>
    %11 = arith.sitofp %10 : vector<64x128xi32> to vector<64x128xf32>
    %c0_3 = arith.constant 0 : index
    %c0_4 = arith.constant 0 : index
    %12 = vector.load %arg3[%c0_3, %c0_4] : memref<4x32xf32, #tpu.memory_space<vmem>>, vector<4x32xf32>
    %cst = arith.constant dense<0.000000e+00> : vector<4x128xf32>
    %13 = tpu.matmul %12, %7, %cst {dimension_numbers = #tpu.dot_dimension_numbers<[1], [0], [0], [1], [0, 0, 1, 1], [], []>} : vector<4x32xf32>, vector<32x128xf32>, vector<4x128xf32> -> vector<4x128xf32>
    %c0_5 = arith.constant 0 : index
    %c0_6 = arith.constant 0 : index
    %14 = vector.load %arg4[%c0_5, %c0_6] : memref<4x64xf32, #tpu.memory_space<vmem>>, vector<4x64xf32>
    %cst_7 = arith.constant dense<0.000000e+00> : vector<4x128xf32>
    %15 = tpu.matmul %14, %11, %cst_7 {dimension_numbers = #tpu.dot_dimension_numbers<[1], [0], [0], [1], [0, 0, 1, 1], [], []>} : vector<4x64xf32>, vector<64x128xf32>, vector<4x128xf32> -> vector<4x128xf32>
    %16 = arith.mulf %13, %15 : vector<4x128xf32>
    %cst_8 = arith.constant dense<0.000000e+00> : vector<128xf32>
    %17 = vector.multi_reduction <add>, %16, %cst_8 [0] : vector<4x128xf32> to vector<128xf32>
    %18 = vector.shape_cast %17 : vector<128xf32> to vector<1x128xf32>
    %cst_9 = arith.constant 0.000000e+00 : f32
    %19 = vector.broadcast %cst_9 : f32 to vector<1x128xf32>
    %20 = arith.subf %19, %18 : vector<1x128xf32>
    %21 = math.exp %20 : vector<1x128xf32>
    %cst_10 = arith.constant 1.000000e+00 : f32
    %22 = vector.broadcast %cst_10 : f32 to vector<1x128xf32>
    %23 = arith.addf %22, %21 : vector<1x128xf32>
    %24 = tpu.reciprocal %23 {approx = true} : vector<1x128xf32> -> vector<1x128xf32>
    %c0_11 = arith.constant 0 : index
    %c0_12 = arith.constant 0 : index
    %25 = vector.load %arg5[%c0_11, %c0_12] : memref<1x128xf32, #tpu.memory_space<vmem>>, vector<1x128xf32>
    tpu.vector_store %arg5[%c0_11, %c0_12], %24 {strides = array<i32>} : memref<1x128xf32, #tpu.memory_space<vmem>>, vector<1x128xf32>,
    return
  }
  func.func @transform_0(%arg0: i32) -> (i32, i32) {
    %c0_i32 = arith.constant 0 : i32
    %c0_i32_0 = arith.constant 0 : i32
    return %c0_i32, %arg0 : i32, i32
  }
  func.func @transform_1(%arg0: i32) -> (i32, i32) {
    %c0_i32 = arith.constant 0 : i32
    %c0_i32_0 = arith.constant 0 : i32
    return %c0_i32, %arg0 : i32, i32
  }
  func.func @transform_2(%arg0: i32) -> (i32, i32) {
    %c0_i32 = arith.constant 0 : i32
    %c0_i32_0 = arith.constant 0 : i32
    %c0_i32_1 = arith.constant 0 : i32
    return %c0_i32, %c0_i32_0 : i32, i32
  }
  func.func @transform_3(%arg0: i32) -> (i32, i32) {
    %c0_i32 = arith.constant 0 : i32
    %c0_i32_0 = arith.constant 0 : i32
    %c0_i32_1 = arith.constant 0 : i32
    return %c0_i32, %c0_i32_0 : i32, i32
  }
  func.func @transform_4(%arg0: i32) -> (i32, i32) {
    %c0_i32 = arith.constant 0 : i32
    %c0_i32_0 = arith.constant 0 : i32
    return %c0_i32, %arg0 : i32, i32
  }
}

</mosaic_0001>

<bundles_post_ra>
// kernel: tpu_custom_call.1
= control target key start
LH: loop header
LB: loop body
LE: loop exit
PB: predicated region body
PF: predicated region fallthrough
CT: control target
= control target key end

     0   :  { %9 = vsyncpa [#allocation3], 0  ;;  %s1093_s0 = inlined_call_operand.hbm [shape: s32[1,512], index: 0, kind: input, shape index: {}]   ;;  %s1094_s1 = inlined_call_operand.hbm [shape: s32[1,512], index: 1, kind: input, shape index: {}]   ;;  %s1095_s2 = inlined_call_operand.vmem [shape: f32[4,32], index: 2, kind: input, shape index: {}]   ;;  %s1096_s3 = inlined_call_operand.vmem [shape: f32[4,64], index: 3, kind: input, shape index: {}]   ;;  %s1097_s4 = inlined_call_operand.hbm [shape: f32[1,512], index: 4, kind: output, shape index: {}]  }
   0x1   :  { %11 = vsyncpa [#allocation3 + $0x1], 0 }
   0x2   :  { %12 = vsyncpa [#allocation6], 0 }
   0x3   :  { %14 = vsyncpa [#allocation6 + $0x1], 0 }
   0x4   :  { %15 = vsyncpa [#allocation4], 0 }
   0x5   :  { %17 = vsyncpa [#allocation4 + $0x1], 0  ;;  %s881_s15 = smov 0   ;;  %s883_s16 = smov 0  }
   0x6   :  { %s885_s17 = smov 0   ;;  %s887_s18 = smov 0  }
   0x7 LB: > { %s902_s19 = sadd.s32 4294967295, %s847_s18   ;;  %s559_s20 = sadd.s32 4294967294, %s847_s18   ;;  %s847_s18 = sphi %s887_s18, %s1115_s18   ;;  %s843_s17 = sphi %s885_s17, %s1114_s17   ;;  %s839_s16 = sphi %s883_s16, %s1113_s16   ;;  %s835_s15 = sphi %s881_s15, %s1112_s15  }
   0x8   : > { %s906_s21 = sadd.s32 1, %s847_s18   ;;  %s30_s22 = sadd.s32 1, %s843_s17 }
   0x9   : > { %s27_s23 = ssub.s32 %s847_s18, %s906_s21  ;;  %p37_p0 = scmp.ne.s32.totalorder %s843_s17, %s839_s16 }
   0xa   : > { %p28_p1 = scmp.eq.s32.totalorder %s27_s23, 0  ;;  %p38_p2 = scmp.eq.s32.totalorder %s847_s18, 0 }
   0xb   : > { %p43_p3 = scmp.ne.s32.totalorder %s839_s16, %s835_s15  ;;  %p44_p4 = scmp.eq.s32.totalorder %s902_s19, 0 }
   0xc   : > { %s918_s24 = scalar_select %p28_p1, %s843_s17, %s30_s22  }
   0xd   : > { %p920_p5 = por %p38_p2, %p37_p0  ;;  %p924_p6 = por %p44_p4, %p43_p3 }
   0xe   : > { %p135_p7 = scmp.eq.s32.totalorder %s902_s19, 3  ;;  %p141_p8 = scmp.eq.s32.totalorder %s559_s20, 3 }
   0xf   : > { %s1101_s26 = scalar_select %p924_p6, 1, 0 }
  0x10   : > { %p675_p9 = scmp.lt.s32.totalorder %s847_s18, 4  ;;  %p930_p10 = por %p135_p7, %p37_p0 }
  0x11   : > { %p934_p11 = por %p141_p8, %p43_p3  ;;  %s939_s29 = sand.u32 1, %s843_s17  }
  0x12   : > { %s1102_s27 = scalar_select %p930_p10, 1, 0 }
  0x13   : > { %s1103_s28 = scalar_select %p934_p11, 1, 0 }
  0x14   : > { %s562_s30 = sshll.u32 %s847_s18, 4  ;;  %s170_s8 = scalar_lea.vmem [#allocation2], %s939_s29 }
  0x15   : > { %s947_s7 = scalar_lea.hbm %s1093_s0, %s562_s30  ;;  %s177_s9 = sshll.u32 %s170_s8, 4  ;;  %s950_s9 = int_to_ptr.vmem [resolvable:$true] %s177_s9 }
  0x16   : > { %p954_p12 = pnand %p675_p9, %p920_p5  ;;  %s168_s11 = scalar_lea.sflag [#allocation3], %s939_s29 }
  0x17   : > { %s717_s12 = scalar_lea.hbm %s947_s7, 16  ;;  %s722_s20 = scalar_lea.hbm %s1093_s0, 64 }
  0x18   : > { %p718_p1 = scmp.ne.s32.totalorder %s947_s7, %s717_s12  ;;  %p719_p2 = pneg %p954_p12 }
  0x19   : > { %p723_p5 = scmp.lt.u32.totalorder %s947_s7, %s1093_s0  ;;  %p724_p7 = scmp.lt.u32.totalorder %s722_s20, %s717_s12 }
  0x1a   : > { %p720_p3 = pnand %p719_p2, %p718_p1  ;;  %p726_p9 = scmp.lt.u32.totalorder %s717_s12, %s947_s7 }
  0x1b   : > { %p725_p8 = por %p724_p7, %p723_p5 }
  0x1c   : > { %p721_p4 = pneg %p720_p3 }
  0x1d   : > { %p727_p13 = por %p726_p9, %p725_p8 }
  0x1f   : > { %p728_p0 = pnand %p727_p13, %p721_p4 }
  0x21   : > { %731 = shalt.err (!%p728_p0)
}
  0x22   : > { %s732_s25 = scalar_lea.vmem %s950_s9, 16  ;;  %s849_s5 = smov [#allocation2]  }
  0x23   : > { %p733_p1 = scmp.ne.s32.totalorder %s950_s9, %s732_s25  ;;  %s737_s6 = sshll.u32 %s849_s5, 4  ;;  %s738_s6 = int_to_ptr.vmem [resolvable:$false] %s737_s6 }
  0x24   : > { %s739_s8 = scalar_lea.vmem %s738_s6, 32  ;;  %p740_p10 = scmp.lt.s32.totalorder %s950_s9, %s738_s6 }
  0x25   : > { %p735_p3 = pnand %p733_p1, %p719_p2  ;;  %p741_p5 = scmp.lt.s32.totalorder %s739_s8, %s732_s25 }
  0x27   : > { %p736_p11 = pneg %p735_p3  ;;  %p742_p7 = por %p741_p5, %p740_p10 }
  0x29   : > { %p743_p8 = pnand %p742_p7, %p736_p11 }
  0x2b   : > { %746 = shalt.err (!%p743_p8)
}
  0x2c   : > { %667 = dma.hbm_to_vmem [thread:$0]  (!%p954_p12), %s947_s7, 16, %s950_s9, %s168_s11  }
  0x2d   : > { %p1105_p13 = scmp.lt.s32.totalorder %s847_s18, 5  ;;  %p1106_p0 = scmp.ge.s32.totalorder %s847_s18, 1 }
  0x2e   : > { %s999_s20 = scalar_lea.hbm %s1094_s1, %s562_s30  ;;  %s187_s22 = scalar_lea.vmem [#allocation5], %s939_s29 }
  0x2f   : > { %p990_p4 = pnand %p1106_p0, %p1105_p13  ;;  %s194_s23 = sshll.u32 %s187_s22, 4  ;;  %s195_s23 = int_to_ptr.vmem [resolvable:$true] %s194_s23 }
  0x30   : > { %s185_s7 = scalar_lea.sflag [#allocation6], %s939_s29  ;;  %s747_s9 = scalar_lea.hbm %s999_s20, 16 }
  0x31   : > { %s1107_s12 = scalar_select %p990_p4, 1, 0 }
  0x32   : > { %p748_p10 = scmp.ne.s32.totalorder %s999_s20, %s747_s9  ;;  %s752_s5 = scalar_lea.hbm %s1094_s1, 64 }
  0x33   : > { %p753_p1 = scmp.lt.u32.totalorder %s999_s20, %s1094_s1  ;;  %p754_p3 = scmp.lt.u32.totalorder %s752_s5, %s747_s9 }
  0x34   : > { %p750_p11 = pnand %p748_p10, %p719_p2  ;;  %p756_p7 = scmp.lt.u32.totalorder %s747_s9, %s999_s20 }
  0x35   : > { %p755_p5 = por %p754_p3, %p753_p1 }
  0x36   : > { %p751_p9 = pneg %p750_p11 }
  0x37   : > { %p757_p8 = por %p756_p7, %p755_p5 }
  0x39   : > { %p758_p13 = pnand %p757_p8, %p751_p9 }
  0x3b   : > { %761 = shalt.err (!%p758_p13)
}
  0x3c   : > { %s762_s29 = scalar_lea.vmem %s195_s23, 16  ;;  %s850_s8 = smov [#allocation5]  }
  0x3d   : > { %p763_p0 = scmp.ne.s32.totalorder %s195_s23, %s762_s29  ;;  %s767_s13 = sshll.u32 %s850_s8, 4  ;;  %s768_s13 = int_to_ptr.vmem [resolvable:$false] %s767_s13 }
  0x3e   : > { %s769_s14 = scalar_lea.vmem %s768_s13, 32  ;;  %p770_p6 = scmp.lt.s32.totalorder %s195_s23, %s768_s13 }
  0x3f   : > { %p765_p10 = pnand %p763_p0, %p719_p2  ;;  %p771_p4 = scmp.lt.s32.totalorder %s769_s14, %s762_s29 }
  0x41   : > { %p766_p11 = pneg %p765_p10  ;;  %p772_p1 = por %p771_p4, %p770_p6 }
  0x43   : > { %p773_p3 = pnand %p772_p1, %p766_p11 }
  0x45   : > { %776 = shalt.err (!%p773_p3)
}
  0x46   : > { %670 = dma.hbm_to_vmem [thread:$0]  (!%p954_p12), %s999_s20, 16, %s195_s23, %s185_s7  }
  0x47   : > { %p1108_p9 = scmp.ne.s32.totalorder %s1107_s12, 0 }
  0x48   : > { %s1025_s22 = sand.u32 (!%p1108_p9), 1, %s839_s16   ;;  %p1109_p2 = scmp.ne.s32.totalorder (!%p1108_p9), %s1101_s26, 0 }
  0x49   : > { %203 = sbr.rel (%p1108_p9) target bundleno = 375 (0x177), region = 36  ;;  %s206_s9 = scalar_lea.sflag (!%p1108_p9), [#allocation3], %s1025_s22 }
  0x4a   : > { %s208_s11 = scalar_lea.vmem (!%p1108_p9), [#allocation2], %s1025_s22 }
  0x50   : > { %822 = dma.done.wait (%p1109_p2), %s206_s9, 16  }
  0x51   : > { %824 = vsyncadd (%p1109_p2), %s206_s9, 4294967280  ;;  %s214_s10 = scalar_lea.sflag [#allocation6], %s1025_s22  ;;  %s216_s20 = scalar_lea.vmem [#allocation5], %s1025_s22 }
  0x52   : > { %826 = dma.done.wait (%p1109_p2), %s214_s10, 16  }
  0x53   : > { %828 = vsyncadd (%p1109_p2), %s214_s10, 4294967280  ;;  %v245_v0 = vlaneseq  ;;  %v851_v1 = vmov 0.0|0.0   ;;  %vm852_vm0 = vmmov 0   ;;  %v853_v3 = vmov 0.0   ;;  %v570_v7 = vld [vmem:[%s216_s20] ss:$0 sm:$0xff] }
  0x54   : > { %646 = vmatprep.subr.bf16.mxu1 %v851_v1  ;;  %640 = vmatprep.subr.bf16.mxu0 %v851_v1  ;;  %v565_v8 = vld [vmem:[%s208_s11] ss:$0 sm:$0xff]  ;;  %v854_v11 = vmov 1.0|1.0   ;;  %s593_s25 = sshll.u32 %s902_s19, 4  ;;  %s242_s5 = scalar_lea.vmem [#allocation7], %s1025_s22 }
  0x55   : > { %v246_v2 = vshrl.u32 %v245_v0, 7  ;;  %618 = vmatprep.mubr.msk.f32.mxu0 %vm852_vm0, %v853_v3  ;;  %637 = vmatprep.mubr.msk.f32.mxu1 %vm852_vm0, %v853_v3  ;;  %v298_v14 = vld [vmem:[%s1095_s2] sm:$0xf]  ;;  %s476_s30 = sshll.u32 %s242_s5, 4  ;;  %s1050_s8 = scalar_lea.hbm %s1097_s4, %s593_s25  ;;  %s1052_s30 = int_to_ptr.vmem [resolvable:$true] %s476_s30 }
  0x56   : > { %v373_v15 = vld [vmem:[%s1096_s3] sm:$0xf]  ;;  %s464_s13 = scalar_lea.sflag [#allocation4], %s1025_s22  ;;  %s777_s14 = scalar_lea.vmem %s1052_s30, 16 }
  0x57   : > { %v247_v4 = vadd.s32 8, %v246_v2  ;;  %v248_v5 = vadd.s32 16, %v246_v2  ;;  %v249_v6 = vadd.s32 24, %v246_v2  ;;  %v250_v9 = vadd.s32 32, %v246_v2  ;;  %p778_p6 = scmp.ne.s32.totalorder %s1052_s30, %s777_s14  ;;  %p1110_p12 = scmp.ne.s32.totalorder %s1102_s27, 0 }
  0x58   : > { %v251_v10 = vadd.s32 40, %v246_v2  ;;  %vm274_vm1 = vcmp.eq.s32.totalorder %v246_v2, %v570_v7  ;;  %vm258_vm6 = vcmp.eq.s32.totalorder %v246_v2, %v565_v8  ;;  %v252_v12 = vadd.s32 48, %v246_v2  ;;  %s855_s19 = smov [#allocation7]  }
  0x59   : > { %vm275_vm2 = vcmp.eq.s32.totalorder %v247_v4, %v570_v7  ;;  %vm276_vm3 = vcmp.eq.s32.totalorder %v248_v5, %v570_v7  ;;  %vm277_vm4 = vcmp.eq.s32.totalorder %v249_v6, %v570_v7  ;;  %vm259_vm7 = vcmp.eq.s32.totalorder %v247_v4, %v565_v8  ;;  %p779_p4 = pnand %p778_p6, %p1110_p12  ;;  %s781_s9 = sshll.u32 %s855_s19, 4  ;;  %s782_s9 = int_to_ptr.vmem [resolvable:$false] %s781_s9 }
  0x5a   : > { %vm647_vm5 = vmpackc.low %vm275_vm2, %vm274_vm1  ;;  %vm260_vm9 = vcmp.eq.s32.totalorder %v248_v5, %v565_v8  ;;  %vm261_vm10 = vcmp.eq.s32.totalorder %v249_v6, %v565_v8  ;;  %vm278_vm12 = vcmp.eq.s32.totalorder %v250_v9, %v570_v7  ;;  %vm279_vm13 = vcmp.eq.s32.totalorder %v251_v10, %v570_v7  ;;  %s783_s11 = scalar_lea.vmem %s782_s9, 32  ;;  %p784_p7 = scmp.lt.s32.totalorder %s1052_s30, %s782_s9 }
  0x5b   : > { %648 = vmatpush3.bf16.msk.msra.mxu1 %vm647_vm5, %v854_v11  ;;  %vm650_vm8 = vmpackc.low %vm277_vm4, %vm276_vm3  ;;  %v253_v13 = vadd.s32 56, %v246_v2  ;;  %vm280_vm0 = vcmp.eq.s32.totalorder %v252_v12, %v570_v7  ;;  %vm299_vm2 = vcmask 261120   ;;  %vm374_vm4 = vcmask 523264   ;;  %p780_p5 = pneg %p779_p4  ;;  %p785_p8 = scmp.lt.s32.totalorder %s783_s11, %s777_s14 }
  0x5c   : > { %649 = vmatprep.subr.bf16.mxu1 %v851_v1  ;;  %vm641_vm11 = vmpackc.low %vm259_vm7, %vm258_vm6  ;;  %vm449_vm5 = vcmask 1043456  }
  0x5d   : > { %642 = vmatpush3.bf16.msk.msra.mxu0 %vm641_vm11, %v854_v11  ;;  %vm644_vm14 = vmpackc.low %vm261_vm10, %vm260_vm9  ;;  %vm281_vm1 = vcmp.eq.s32.totalorder %v253_v13, %v570_v7  ;;  %p786_p13 = por %p785_p8, %p784_p7 }
  0x5e   : > { %643 = vmatprep.subr.bf16.mxu0 %v851_v1  ;;  %vm653_vm15 = vmpackc.low %vm279_vm13, %vm278_vm12 }
  0x5f   : > { %651 = vmatpush3.bf16.msk.msra.mxu1 %vm650_vm8, %v854_v11  ;;  %vm656_vm3 = vmpackc.low %vm281_vm1, %vm280_vm0  ;;  %p787_p0 = pnand %p786_p13, %p780_p5 }
  0x60   : > { %652 = vmatprep.subr.bf16.mxu1 %v851_v1 }
  0x61   : > { %645 = vmatpush3.bf16.msk.msra.mxu0 %vm644_vm14, %v854_v11 }
  0x63   : > { %654 = vmatpush3.bf16.msk.msra.mxu1 %vm653_vm15, %v854_v11 }
  0x64   : > { %655 = vmatprep.subr.bf16.mxu1 %v851_v1  ;;  %619 = vmatmul.mubr.msk.f32.vlgmr.msra.gmra.mrb[0].mxu0 %vm299_vm2, %v298_v14 }
  0x67   : > { %657 = vmatpush3.bf16.msk.msra.mxu1 %vm656_vm3, %v854_v11 }
  0x6a   : > { %638 = vmatmul.mubr.msk.f32.vlgmr.msra.gmra.mrb[0].mxu1 %vm374_vm4, %v373_v15 }
 0x137   : > { %v369_v16 = vpop.f32.mrb[0].mxu0 }
 0x138   : > { %v620_v17 = vpop.f32.mrb[1].mxu0 }
 0x13d   : > { %v444_v18 = vpop.f32.mrb[0].mxu1 }
 0x13e   : > { %v448_v19 = vmul.f32 %v444_v18, %v369_v16  ;;  %v639_v20 = vpop.f32.mrb[1].mxu1 }
 0x140   : > { %v450_v21 = vsel %vm449_vm5, %v448_v19, 0.0 }
 0x141   : > { %v451_v22 = vrot.slane %v450_v21, 4 }
 0x143   : > { %v452_v23 = vadd.f32 %v451_v22, %v450_v21 }
 0x145   : > { %v453_v24 = vrot.slane %v452_v23, 2 }
 0x147   : > { %v454_v25 = vadd.f32 %v453_v24, %v452_v23 }
 0x149   : > { %v455_v26 = vrot.slane %v454_v25, 1 }
 0x14b   : > { %v456_v27 = vadd.f32 %v455_v26, %v454_v25 }
 0x14d   : > { %v457_v28 = vsub.f32 0.0, %v456_v27 }
 0x14f   : > { %v458_v29 = vmul.f32 1.442695, %v457_v28 }
 0x151   : > { %713 = vpow2.f32 %v458_v29 }
 0x15b   : > { %v714_v30 = vpop.eup %713 }
 0x15c   : > { %v460_v31 = vadd.f32 1.0, %v714_v30 }
 0x15e   : > { %715 = vrcp.f32 %v460_v31 }
 0x168   : > { %v716_v32 = vpop.eup %715 }
 0x169   : > { %462 = vst [vmem:[%s242_s5] sm:$0x1] %v716_v32 }
 0x16a   : > { %790 = shalt.err (!%p787_p0)
}
 0x16b   : > { %s791_s22 = scalar_lea.hbm %s1050_s8, 16  ;;  %s795_s26 = scalar_lea.hbm %s1097_s4, 64 }
 0x16c   : > { %p792_p10 = scmp.ne.s32.totalorder %s1050_s8, %s791_s22  ;;  %p796_p3 = scmp.lt.u32.totalorder %s1050_s8, %s1097_s4 }
 0x16d   : > { %p797_p9 = scmp.lt.u32.totalorder %s795_s26, %s791_s22  ;;  %p799_p6 = scmp.lt.u32.totalorder %s791_s22, %s1050_s8 }
 0x16e   : > { %p793_p11 = pnand %p792_p10, %p1110_p12 }
 0x16f   : > { %p798_p2 = por %p797_p9, %p796_p3 }
 0x170   : > { %p794_p1 = pneg %p793_p11 }
 0x171   : > { %p800_p4 = por %p799_p6, %p798_p2 }
 0x173   : > { %p801_p5 = pnand %p800_p4, %p794_p1 }
 0x175   : > { %804 = shalt.err (!%p801_p5)
}
 0x176   : > { %662 = dma.vmem_to_hbm [thread:$0]  (%p1110_p12), %s1052_s30, 16, %s1050_s8, %s464_s13  }
 0x177 PF: > { %p676_p7 = scmp.ge.s32.totalorder %s847_s18, 2  ;;  %s488_s7 = sand.u32 1, %s835_s15  }
 0x178   : > { %p1111_p8 = scmp.ne.s32.totalorder %s1103_s28, 0  ;;  %s489_s25 = scalar_lea.sflag [#allocation4], %s488_s7 }
 0x17a   : > { %p672_p13 = pnand %p676_p7, %p1111_p8 }
 0x17c   : > { %830 = dma.done.wait (!%p672_p13), %s489_s25, 16  }
 0x17d   : > { %832 = vsyncadd (!%p672_p13), %s489_s25, 4294967280  ;;  %p20_p0 = scmp.ge.s32.totalorder %s906_s21, 6   ;;  %s1112_s15 = smov %s839_s16 }
 0x17e   : > { %s1113_s16 = smov %s843_s17  ;;  %s1114_s17 = smov %s918_s24 }
 0x17f   : > { %s1115_s18 = smov %s906_s21  ;;  %22 = sbr.rel (!%p20_p0) target bundleno = 7 (0x7), region = 94 }
 0x186   :  { %493 = vsyncpa [#allocation3], 1 }
 0x187   :  { %495 = vsyncpa [#allocation3 + $0x1], 1 }
 0x188   :  { %496 = vsyncpa [#allocation6], 1 }
 0x189   :  { %498 = vsyncpa [#allocation6 + $0x1], 1 }
 0x18a   :  { %499 = vsyncpa [#allocation4], 1 }
 0x18b   :  { %501 = vsyncpa [#allocation4 + $0x1], 1 }

</bundles_post_ra>
